<compile_context>
chip_gen: v6e
topology: v6e:2x2x1
jax: 0.10.0
libtpu: 0.0.40
codegen_flags: <defaults>
</compile_context>

<pallas_src>
import functools

import jax
import jax.numpy as jnp
from jax import lax
from jax.experimental import pallas as pl
from jax.experimental.pallas import tpu as pltpu


def _round_up(x, m):
    return ((x + m - 1) // m) * m


def _ceil_div(a, b):
    return -(-a // b)


def rnn_kernel(drive_ref, jT_ref, wout_ref, bout_ref, states_ref, out_ref,
               x_ref, *, one_minus_alpha, tc, t_valid, needs_mask):
    """One grid step integrates `tc` Euler steps for one batch shard.

    drive_ref : [tc, bb, Hp]  alpha*(u@B_in + c_x + noise_std*noise)  (f32)
    jT_ref    : [Hp, Hp]      alpha * J.T  (bf16, grid-invariant)
    wout_ref  : [1, Hp]       readout weights (f32)
    bout_ref  : [1]           readout bias (SMEM scalar)
    states_ref: [tc, bb, Hp]  per-step hidden states (output block)
    out_ref   : [bb, 2]       (output_first, output_final), resident accumulator
    x_ref     : [bb, Hp]      chunk-to-chunk carried hidden state (VMEM scratch)
    """
    t_chunk = pl.program_id(1)

    @pl.when(t_chunk == 0)
    def _():
        x_ref[...] = jnp.zeros_like(x_ref)
        out_ref[...] = jnp.zeros_like(out_ref)

    def step(i, x):
        # Independent of the matmul -> overlaps MXU latency.
        part = one_minus_alpha * x + drive_ref[i]
        r = jnp.tanh(x).astype(jnp.bfloat16)
        jr = jnp.dot(r, jT_ref[...], preferred_element_type=jnp.float32)
        x_new = part + jr
        if needs_mask:
            g = t_chunk * tc + i          # global time step
            x_new = jnp.where(g < t_valid, x_new, x)
        states_ref[i] = x_new
        return x_new

    # x carried in registers; x_ref touched once per chunk.
    x = lax.fori_loop(0, tc, step, x_ref[...], unroll=True)
    x_ref[...] = x

    # Readout off the serial per-step chain (first / last time chunk only).
    @pl.when(t_chunk == 0)
    def _():
        r1 = jnp.tanh(states_ref[0])
        out_ref[:, 0:1] = (jnp.sum(r1 * wout_ref[...], axis=-1, keepdims=True)
                           + bout_ref[0])

    @pl.when(t_chunk == pl.num_programs(1) - 1)
    def _():
        rT = jnp.tanh(x)
        out_ref[:, 1:2] = (jnp.sum(rT * wout_ref[...], axis=-1, keepdims=True)
                           + bout_ref[0])


def rnn_forward_pallas(input_seq, noise, params, *, dt, tau, noise_std,
                       time_chunk_cap=128):
    T, B, I = input_seq.shape
    H = params["J"].shape[0]
    alpha = float(dt / tau)

    # ---- batch tiling: sublane-dense, 2 shards for the v7x second core ------
    Bp = _round_up(B, 8)
    if Bp >= 16:
        Bp = _round_up(Bp, 16)
        bb = Bp // 2
    else:
        bb = Bp
    nb = Bp // bb
    Hp = _round_up(H, 128)

    # ---- time chunking: minimal tail padding, no divisor requirement --------
    nct = _ceil_div(T, min(time_chunk_cap, T))
    tc = _ceil_div(T, nct)
    Tp = nct * tc
    needs_mask = (Tp != T)

    # ---- drive term (alpha folded), built directly at padded layout ---------
    bin_mat = jnp.concatenate(
        [params["b_m"].T, params["b_c"].T, params["b_cm"].T, params["b_cc"].T],
        axis=0)                                                   # [4, H]
    bin_p = jnp.zeros((I, Hp), jnp.float32).at[:, :H].set(alpha * bin_mat)
    cx_p = jnp.zeros((Hp,), jnp.float32).at[:H].set(alpha * params["c_x"])

    in_p = jnp.zeros((Tp, Bp, I), jnp.float32).at[:T, :B, :].set(input_seq)
    drive_p = (in_p.reshape(Tp * Bp, I) @ bin_p).reshape(Tp, Bp, Hp) + cx_p
    if noise.shape == (Tp, Bp, Hp):     # caller may supply pre-padded noise
        drive_p = drive_p + (alpha * noise_std) * noise
    else:
        drive_p = drive_p.at[:T, :B, :H].add((alpha * noise_std) * noise)

    # alpha*J.T in bf16 (single-pass MXU); readout weights stay f32.
    jT_p = jnp.zeros((Hp, Hp), jnp.float32).at[:H, :H].set(alpha * params["J"].T)
    jT_p = jT_p.astype(jnp.bfloat16)
    wout_p = jnp.zeros((1, Hp), jnp.float32).at[:, :H].set(
        params["W_out_w"].reshape(1, H))
    bout = params["W_out_b"].reshape(1).astype(jnp.float32)

    kernel = functools.partial(rnn_kernel, one_minus_alpha=1.0 - alpha, tc=tc,
                               t_valid=T, needs_mask=needs_mask)

    # Explicit scoped-VMEM limit with headroom (v7x has only 64 MiB physical).
    est = (2 * tc * bb * Hp * 4        # drive chunk, double-buffered
           + 2 * tc * bb * Hp * 4      # states chunk, double-buffered
           + 2 * Hp * Hp * 2           # alpha*J.T (bf16), grid-invariant
           + bb * Hp * 4 + 8 * Hp + 4096)
    vmem_limit = int(min(100 << 20, max(32 << 20, 2 * est)))

    states_p, out_p = pl.pallas_call(
        kernel,
        out_shape=(jax.ShapeDtypeStruct((Tp, Bp, Hp), jnp.float32),
                   jax.ShapeDtypeStruct((Bp, 2), jnp.float32)),
        grid=(nb, nct),
        in_specs=[
            pl.BlockSpec((tc, bb, Hp), lambda b, c: (c, b, 0)),   # drive chunk
            pl.BlockSpec((Hp, Hp), lambda b, c: (0, 0)),          # alpha*J.T
            pl.BlockSpec((1, Hp), lambda b, c: (0, 0)),           # W_out weight
            pl.BlockSpec(memory_space=pltpu.MemorySpace.SMEM),    # W_out bias
        ],
        out_specs=(
            pl.BlockSpec((tc, bb, Hp), lambda b, c: (c, b, 0)),   # states chunk
            pl.BlockSpec((bb, 2), lambda b, c: (b, 0)),           # (first, final)
        ),
        scratch_shapes=[pltpu.VMEM((bb, Hp), jnp.float32)],       # carried x
        compiler_params=pltpu.CompilerParams(
            dimension_semantics=("parallel", "arbitrary"),        # batch ∥, time serial
            vmem_limit_bytes=vmem_limit),
    )(drive_p, jT_p, wout_p, bout)

    # TODO(synk): consumers that accept the padded [Tp,Bp,Hp] layout can skip
    # this slice (it is a full HBM pass over the states tensor).
    states = states_p[:T, :B, :H]
    outputs = out_p[:B, :]
    return outputs, states


def rnn_forward_ref(input_seq, noise, params, *, dt, tau, noise_std):
    """Pure-JAX f32 reference mirroring the PyTorch forward (train_mode=True)."""
    T, B, _ = input_seq.shape
    H = params["J"].shape[0]
    Jw = params["J"]
    bin_mat = jnp.concatenate(
        [params["b_m"].T, params["b_c"].T, params["b_cm"].T, params["b_cc"].T],
        axis=0)
    wout = params["W_out_w"].reshape(H, 1)
    bout = params["W_out_b"].reshape(1, 1)

    x = jnp.zeros((B, H), jnp.float32)
    states = []
    out_first = None
    for t in range(T):
        r = jnp.tanh(x)
        u = input_seq[t]
        input_term = jnp.dot(u, bin_mat, precision=lax.Precision.HIGHEST)
        jr = jnp.dot(r, Jw.T, precision=lax.Precision.HIGHEST)
        dx = dt / tau * (-x + jr + input_term
                         + params["c_x"][None, :] + noise_std * noise[t])
        x = x + dx
        states.append(x)
        if t == 0:
            out_first = jnp.tanh(x) @ wout + bout
    out_final = jnp.tanh(x) @ wout + bout
    outputs = jnp.concatenate([out_first, out_final], axis=-1)
    return outputs, jnp.stack(states, axis=0)


def init_params(key, hidden_size, input_size=4):
    ks = jax.random.split(key, 7)
    H = hidden_size
    params = {
        "J": (hidden_size ** -0.5) * jax.random.normal(ks[0], (H, H), jnp.float32),
        "b_m": 0.5 * jax.random.normal(ks[1], (H, 1), jnp.float32),
        "b_c": 0.5 * jax.random.normal(ks[2], (H, 1), jnp.float32),
        "b_cm": 0.5 * jax.random.normal(ks[3], (H, 1), jnp.float32),
        "b_cc": 0.5 * jax.random.normal(ks[4], (H, 1), jnp.float32),
        "c_x": jnp.zeros((H,), jnp.float32),
        # nn.init.constant_(W_out.weight, 0.0); bias keeps default uniform init.
        "W_out_w": jnp.zeros((1, H), jnp.float32),
        "W_out_b": (1.0 / (H ** 0.5)) * (2.0 * jax.random.uniform(ks[5], (1,)) - 1.0),
    }
    return params


if __name__ == "__main__":
    T, B, I, H = 8, 2, 4, 32
    tau, dt, noise_std = 0.01, 0.001, 0.1

    key = jax.random.PRNGKey(0)
    k_param, k_in, k_noise, k_wout = jax.random.split(key, 4)

    params = init_params(k_param, H, I)
    # Override the constant-zero W_out init with small random weights so the
    # readout path is actually exercised by the parity check (init-only change;
    # forward-pass math is unchanged).
    params["W_out_w"] = 0.1 * jax.random.normal(k_wout, (1, H), jnp.float32)

    input_seq = jax.random.normal(k_in, (T, B, I), jnp.float32)
    noise = jax.random.normal(k_noise, (T, B, H), jnp.float32)   # rho_x samples

    outputs, states = rnn_forward_pallas(
        input_seq, noise, params, dt=dt, tau=tau, noise_std=noise_std)
    outputs = jax.block_until_ready(outputs)
    states = jax.block_until_ready(states)

    outputs_ref, states_ref = rnn_forward_ref(
        input_seq, noise, params, dt=dt, tau=tau, noise_std=noise_std)

    assert outputs.shape == (B, 2) and states.shape == (T, B, H)
    # bf16 MXU recurrence vs f32 reference: error compounds over T serial steps,
    # so tolerances are looser than pure-f32 parity.
    assert jnp.allclose(states, states_ref, rtol=5e-2, atol=5e-3), (
        float(jnp.max(jnp.abs(states - states_ref))))
    assert jnp.allclose(outputs, outputs_ref, rtol=5e-2, atol=5e-3), (
        float(jnp.max(jnp.abs(outputs - outputs_ref))))

    print("KERNEL_OK")
</pallas_src>

<mosaic_0001>
module attributes {stable_mosaic.version = 11 : i64} {
  func.func @rnn_kernel(%arg0: i32, %arg1: i32, %arg2: memref<8x8x128xf32, #tpu.memory_space<vmem>>, %arg3: memref<128x128xbf16, #tpu.memory_space<vmem>>, %arg4: memref<1x128xf32, #tpu.memory_space<vmem>>, %arg5: memref<1xf32, #tpu.memory_space<smem>>, %arg6: memref<8x8x128xf32, #tpu.memory_space<vmem>>, %arg7: memref<8x2xf32, #tpu.memory_space<vmem>>, %arg8: memref<8x128xf32, #tpu.memory_space<vmem>>) attributes {dimension_semantics = [#tpu.dimension_semantics<parallel>, #tpu.dimension_semantics<arbitrary>], iteration_bounds = array<i64: 1, 1>, scalar_prefetch = 0 : i64, scratch_operands = 1 : i64, tpu.core_type = #tpu.core_type<tc>, window_params = [{transform_indices = @transform_0, window_bounds = array<i64: 8, 8, 128>}, {pipeline_mode = #tpu.pipeline_mode<synchronous>, transform_indices = @transform_1, window_bounds = array<i64: 128, 128>}, {pipeline_mode = #tpu.pipeline_mode<synchronous>, transform_indices = @transform_2, window_bounds = array<i64: 1, 128>}, {transform_indices = @transform_3, window_bounds = array<i64: 1>}, {transform_indices = @transform_4, window_bounds = array<i64: 8, 8, 128>}, {transform_indices = @transform_5, window_bounds = array<i64: 8, 2>}]} {
    %c0_i32 = arith.constant 0 : i32
    %0 = arith.cmpi eq, %arg1, %c0_i32 : i32
    %1 = arith.extui %0 : i1 to i32
    %c0_i32_0 = arith.constant 0 : i32
    %2 = arith.cmpi ne, %1, %c0_i32_0 : i32
    scf.if %2 {
      %cst_72 = arith.constant 0.000000e+00 : f32
      %131 = vector.broadcast %cst_72 : f32 to vector<8x128xf32>
      %c0_73 = arith.constant 0 : index
      %c0_74 = arith.constant 0 : index
      %132 = vector.load %arg8[%c0_73, %c0_74] : memref<8x128xf32, #tpu.memory_space<vmem>>, vector<8x128xf32>
      tpu.vector_store %arg8[%c0_73, %c0_74], %131 {strides = array<i32>} : memref<8x128xf32, #tpu.memory_space<vmem>>, vector<8x128xf32>,
      %cst_75 = arith.constant 0.000000e+00 : f32
      %133 = vector.broadcast %cst_75 : f32 to vector<8x2xf32>
      %c0_76 = arith.constant 0 : index
      %c0_77 = arith.constant 0 : index
      %134 = vector.load %arg7[%c0_76, %c0_77] : memref<8x2xf32, #tpu.memory_space<vmem>>, vector<8x2xf32>
      tpu.vector_store %arg7[%c0_76, %c0_77], %133 {strides = array<i32>} : memref<8x2xf32, #tpu.memory_space<vmem>>, vector<8x2xf32>,
    } else {
    }
    %c0 = arith.constant 0 : index
    %c0_1 = arith.constant 0 : index
    %3 = vector.load %arg8[%c0, %c0_1] : memref<8x128xf32, #tpu.memory_space<vmem>>, vector<8x128xf32>
    %c0_i32_2 = arith.constant 0 : i32
    %cst = arith.constant 0.899999976 : f32
    %4 = vector.broadcast %cst : f32 to vector<8x128xf32>
    %5 = arith.mulf %4, %3 : vector<8x128xf32>
    %6 = arith.index_cast %c0_i32_2 : i32 to index
    %c0_3 = arith.constant 0 : index
    %c0_4 = arith.constant 0 : index
    %7 = vector.load %arg2[%6, %c0_3, %c0_4] : memref<8x8x128xf32, #tpu.memory_space<vmem>>, vector<1x8x128xf32>
    %8 = vector.shape_cast %7 : vector<1x8x128xf32> to vector<8x128xf32>
    %9 = arith.addf %5, %8 : vector<8x128xf32>
    %10 = math.tanh %3 : vector<8x128xf32>
    %11 = arith.truncf %10 : vector<8x128xf32> to vector<8x128xbf16>
    %c0_5 = arith.constant 0 : index
    %c0_6 = arith.constant 0 : index
    %12 = vector.load %arg3[%c0_5, %c0_6] : memref<128x128xbf16, #tpu.memory_space<vmem>>, vector<128x128xbf16>
    %cst_7 = arith.constant dense<0.000000e+00> : vector<8x128xf32>
    %13 = tpu.matmul %11, %12, %cst_7 {dimension_numbers = #tpu.dot_dimension_numbers<[1], [0], [0], [1], [0, 0, 1, 1], [], []>} : vector<8x128xbf16>, vector<128x128xbf16>, vector<8x128xf32> -> vector<8x128xf32>
    %14 = arith.addf %9, %13 : vector<8x128xf32>
    %15 = arith.index_cast %c0_i32_2 : i32 to index
    %c0_8 = arith.constant 0 : index
    %c0_9 = arith.constant 0 : index
    %16 = vector.load %arg6[%15, %c0_8, %c0_9] : memref<8x8x128xf32, #tpu.memory_space<vmem>>, vector<1x8x128xf32>
    %17 = vector.shape_cast %16 : vector<1x8x128xf32> to vector<8x128xf32>
    %18 = vector.shape_cast %14 : vector<8x128xf32> to vector<1x8x128xf32>
    tpu.vector_store %arg6[%15, %c0_8, %c0_9], %18 {strides = array<i32>} : memref<8x8x128xf32, #tpu.memory_space<vmem>>, vector<1x8x128xf32>,
    %c1_i32 = arith.constant 1 : i32
    %cst_10 = arith.constant 0.899999976 : f32
    %19 = vector.broadcast %cst_10 : f32 to vector<8x128xf32>
    %20 = arith.mulf %19, %14 : vector<8x128xf32>
    %21 = arith.index_cast %c1_i32 : i32 to index
    %c0_11 = arith.constant 0 : index
    %c0_12 = arith.constant 0 : index
    %22 = vector.load %arg2[%21, %c0_11, %c0_12] : memref<8x8x128xf32, #tpu.memory_space<vmem>>, vector<1x8x128xf32>
    %23 = vector.shape_cast %22 : vector<1x8x128xf32> to vector<8x128xf32>
    %24 = arith.addf %20, %23 : vector<8x128xf32>
    %25 = math.tanh %14 : vector<8x128xf32>
    %26 = arith.truncf %25 : vector<8x128xf32> to vector<8x128xbf16>
    %c0_13 = arith.constant 0 : index
    %c0_14 = arith.constant 0 : index
    %27 = vector.load %arg3[%c0_13, %c0_14] : memref<128x128xbf16, #tpu.memory_space<vmem>>, vector<128x128xbf16>
    %cst_15 = arith.constant dense<0.000000e+00> : vector<8x128xf32>
    %28 = tpu.matmul %26, %27, %cst_15 {dimension_numbers = #tpu.dot_dimension_numbers<[1], [0], [0], [1], [0, 0, 1, 1], [], []>} : vector<8x128xbf16>, vector<128x128xbf16>, vector<8x128xf32> -> vector<8x128xf32>
    %29 = arith.addf %24, %28 : vector<8x128xf32>
    %30 = arith.index_cast %c1_i32 : i32 to index
    %c0_16 = arith.constant 0 : index
    %c0_17 = arith.constant 0 : index
    %31 = vector.load %arg6[%30, %c0_16, %c0_17] : memref<8x8x128xf32, #tpu.memory_space<vmem>>, vector<1x8x128xf32>
    %32 = vector.shape_cast %31 : vector<1x8x128xf32> to vector<8x128xf32>
    %33 = vector.shape_cast %29 : vector<8x128xf32> to vector<1x8x128xf32>
    tpu.vector_store %arg6[%30, %c0_16, %c0_17], %33 {strides = array<i32>} : memref<8x8x128xf32, #tpu.memory_space<vmem>>, vector<1x8x128xf32>,
    %c2_i32 = arith.constant 2 : i32
    %cst_18 = arith.constant 0.899999976 : f32
    %34 = vector.broadcast %cst_18 : f32 to vector<8x128xf32>
    %35 = arith.mulf %34, %29 : vector<8x128xf32>
    %36 = arith.index_cast %c2_i32 : i32 to index
    %c0_19 = arith.constant 0 : index
    %c0_20 = arith.constant 0 : index
    %37 = vector.load %arg2[%36, %c0_19, %c0_20] : memref<8x8x128xf32, #tpu.memory_space<vmem>>, vector<1x8x128xf32>
    %38 = vector.shape_cast %37 : vector<1x8x128xf32> to vector<8x128xf32>
    %39 = arith.addf %35, %38 : vector<8x128xf32>
    %40 = math.tanh %29 : vector<8x128xf32>
    %41 = arith.truncf %40 : vector<8x128xf32> to vector<8x128xbf16>
    %c0_21 = arith.constant 0 : index
    %c0_22 = arith.constant 0 : index
    %42 = vector.load %arg3[%c0_21, %c0_22] : memref<128x128xbf16, #tpu.memory_space<vmem>>, vector<128x128xbf16>
    %cst_23 = arith.constant dense<0.000000e+00> : vector<8x128xf32>
    %43 = tpu.matmul %41, %42, %cst_23 {dimension_numbers = #tpu.dot_dimension_numbers<[1], [0], [0], [1], [0, 0, 1, 1], [], []>} : vector<8x128xbf16>, vector<128x128xbf16>, vector<8x128xf32> -> vector<8x128xf32>
    %44 = arith.addf %39, %43 : vector<8x128xf32>
    %45 = arith.index_cast %c2_i32 : i32 to index
    %c0_24 = arith.constant 0 : index
    %c0_25 = arith.constant 0 : index
    %46 = vector.load %arg6[%45, %c0_24, %c0_25] : memref<8x8x128xf32, #tpu.memory_space<vmem>>, vector<1x8x128xf32>
    %47 = vector.shape_cast %46 : vector<1x8x128xf32> to vector<8x128xf32>
    %48 = vector.shape_cast %44 : vector<8x128xf32> to vector<1x8x128xf32>
    tpu.vector_store %arg6[%45, %c0_24, %c0_25], %48 {strides = array<i32>} : memref<8x8x128xf32, #tpu.memory_space<vmem>>, vector<1x8x128xf32>,
    %c3_i32 = arith.constant 3 : i32
    %cst_26 = arith.constant 0.899999976 : f32
    %49 = vector.broadcast %cst_26 : f32 to vector<8x128xf32>
    %50 = arith.mulf %49, %44 : vector<8x128xf32>
    %51 = arith.index_cast %c3_i32 : i32 to index
    %c0_27 = arith.constant 0 : index
    %c0_28 = arith.constant 0 : index
    %52 = vector.load %arg2[%51, %c0_27, %c0_28] : memref<8x8x128xf32, #tpu.memory_space<vmem>>, vector<1x8x128xf32>
    %53 = vector.shape_cast %52 : vector<1x8x128xf32> to vector<8x128xf32>
    %54 = arith.addf %50, %53 : vector<8x128xf32>
    %55 = math.tanh %44 : vector<8x128xf32>
    %56 = arith.truncf %55 : vector<8x128xf32> to vector<8x128xbf16>
    %c0_29 = arith.constant 0 : index
    %c0_30 = arith.constant 0 : index
    %57 = vector.load %arg3[%c0_29, %c0_30] : memref<128x128xbf16, #tpu.memory_space<vmem>>, vector<128x128xbf16>
    %cst_31 = arith.constant dense<0.000000e+00> : vector<8x128xf32>
    %58 = tpu.matmul %56, %57, %cst_31 {dimension_numbers = #tpu.dot_dimension_numbers<[1], [0], [0], [1], [0, 0, 1, 1], [], []>} : vector<8x128xbf16>, vector<128x128xbf16>, vector<8x128xf32> -> vector<8x128xf32>
    %59 = arith.addf %54, %58 : vector<8x128xf32>
    %60 = arith.index_cast %c3_i32 : i32 to index
    %c0_32 = arith.constant 0 : index
    %c0_33 = arith.constant 0 : index
    %61 = vector.load %arg6[%60, %c0_32, %c0_33] : memref<8x8x128xf32, #tpu.memory_space<vmem>>, vector<1x8x128xf32>
    %62 = vector.shape_cast %61 : vector<1x8x128xf32> to vector<8x128xf32>
    %63 = vector.shape_cast %59 : vector<8x128xf32> to vector<1x8x128xf32>
    tpu.vector_store %arg6[%60, %c0_32, %c0_33], %63 {strides = array<i32>} : memref<8x8x128xf32, #tpu.memory_space<vmem>>, vector<1x8x128xf32>,
    %c4_i32 = arith.constant 4 : i32
    %cst_34 = arith.constant 0.899999976 : f32
    %64 = vector.broadcast %cst_34 : f32 to vector<8x128xf32>
    %65 = arith.mulf %64, %59 : vector<8x128xf32>
    %66 = arith.index_cast %c4_i32 : i32 to index
    %c0_35 = arith.constant 0 : index
    %c0_36 = arith.constant 0 : index
    %67 = vector.load %arg2[%66, %c0_35, %c0_36] : memref<8x8x128xf32, #tpu.memory_space<vmem>>, vector<1x8x128xf32>
    %68 = vector.shape_cast %67 : vector<1x8x128xf32> to vector<8x128xf32>
    %69 = arith.addf %65, %68 : vector<8x128xf32>
    %70 = math.tanh %59 : vector<8x128xf32>
    %71 = arith.truncf %70 : vector<8x128xf32> to vector<8x128xbf16>
    %c0_37 = arith.constant 0 : index
    %c0_38 = arith.constant 0 : index
    %72 = vector.load %arg3[%c0_37, %c0_38] : memref<128x128xbf16, #tpu.memory_space<vmem>>, vector<128x128xbf16>
    %cst_39 = arith.constant dense<0.000000e+00> : vector<8x128xf32>
    %73 = tpu.matmul %71, %72, %cst_39 {dimension_numbers = #tpu.dot_dimension_numbers<[1], [0], [0], [1], [0, 0, 1, 1], [], []>} : vector<8x128xbf16>, vector<128x128xbf16>, vector<8x128xf32> -> vector<8x128xf32>
    %74 = arith.addf %69, %73 : vector<8x128xf32>
    %75 = arith.index_cast %c4_i32 : i32 to index
    %c0_40 = arith.constant 0 : index
    %c0_41 = arith.constant 0 : index
    %76 = vector.load %arg6[%75, %c0_40, %c0_41] : memref<8x8x128xf32, #tpu.memory_space<vmem>>, vector<1x8x128xf32>
    %77 = vector.shape_cast %76 : vector<1x8x128xf32> to vector<8x128xf32>
    %78 = vector.shape_cast %74 : vector<8x128xf32> to vector<1x8x128xf32>
    tpu.vector_store %arg6[%75, %c0_40, %c0_41], %78 {strides = array<i32>} : memref<8x8x128xf32, #tpu.memory_space<vmem>>, vector<1x8x128xf32>,
    %c5_i32 = arith.constant 5 : i32
    %cst_42 = arith.constant 0.899999976 : f32
    %79 = vector.broadcast %cst_42 : f32 to vector<8x128xf32>
    %80 = arith.mulf %79, %74 : vector<8x128xf32>
    %81 = arith.index_cast %c5_i32 : i32 to index
    %c0_43 = arith.constant 0 : index
    %c0_44 = arith.constant 0 : index
    %82 = vector.load %arg2[%81, %c0_43, %c0_44] : memref<8x8x128xf32, #tpu.memory_space<vmem>>, vector<1x8x128xf32>
    %83 = vector.shape_cast %82 : vector<1x8x128xf32> to vector<8x128xf32>
    %84 = arith.addf %80, %83 : vector<8x128xf32>
    %85 = math.tanh %74 : vector<8x128xf32>
    %86 = arith.truncf %85 : vector<8x128xf32> to vector<8x128xbf16>
    %c0_45 = arith.constant 0 : index
    %c0_46 = arith.constant 0 : index
    %87 = vector.load %arg3[%c0_45, %c0_46] : memref<128x128xbf16, #tpu.memory_space<vmem>>, vector<128x128xbf16>
    %cst_47 = arith.constant dense<0.000000e+00> : vector<8x128xf32>
    %88 = tpu.matmul %86, %87, %cst_47 {dimension_numbers = #tpu.dot_dimension_numbers<[1], [0], [0], [1], [0, 0, 1, 1], [], []>} : vector<8x128xbf16>, vector<128x128xbf16>, vector<8x128xf32> -> vector<8x128xf32>
    %89 = arith.addf %84, %88 : vector<8x128xf32>
    %90 = arith.index_cast %c5_i32 : i32 to index
    %c0_48 = arith.constant 0 : index
    %c0_49 = arith.constant 0 : index
    %91 = vector.load %arg6[%90, %c0_48, %c0_49] : memref<8x8x128xf32, #tpu.memory_space<vmem>>, vector<1x8x128xf32>
    %92 = vector.shape_cast %91 : vector<1x8x128xf32> to vector<8x128xf32>
    %93 = vector.shape_cast %89 : vector<8x128xf32> to vector<1x8x128xf32>
    tpu.vector_store %arg6[%90, %c0_48, %c0_49], %93 {strides = array<i32>} : memref<8x8x128xf32, #tpu.memory_space<vmem>>, vector<1x8x128xf32>,
    %c6_i32 = arith.constant 6 : i32
    %cst_50 = arith.constant 0.899999976 : f32
    %94 = vector.broadcast %cst_50 : f32 to vector<8x128xf32>
    %95 = arith.mulf %94, %89 : vector<8x128xf32>
    %96 = arith.index_cast %c6_i32 : i32 to index
    %c0_51 = arith.constant 0 : index
    %c0_52 = arith.constant 0 : index
    %97 = vector.load %arg2[%96, %c0_51, %c0_52] : memref<8x8x128xf32, #tpu.memory_space<vmem>>, vector<1x8x128xf32>
    %98 = vector.shape_cast %97 : vector<1x8x128xf32> to vector<8x128xf32>
    %99 = arith.addf %95, %98 : vector<8x128xf32>
    %100 = math.tanh %89 : vector<8x128xf32>
    %101 = arith.truncf %100 : vector<8x128xf32> to vector<8x128xbf16>
    %c0_53 = arith.constant 0 : index
    %c0_54 = arith.constant 0 : index
    %102 = vector.load %arg3[%c0_53, %c0_54] : memref<128x128xbf16, #tpu.memory_space<vmem>>, vector<128x128xbf16>
    %cst_55 = arith.constant dense<0.000000e+00> : vector<8x128xf32>
    %103 = tpu.matmul %101, %102, %cst_55 {dimension_numbers = #tpu.dot_dimension_numbers<[1], [0], [0], [1], [0, 0, 1, 1], [], []>} : vector<8x128xbf16>, vector<128x128xbf16>, vector<8x128xf32> -> vector<8x128xf32>
    %104 = arith.addf %99, %103 : vector<8x128xf32>
    %105 = arith.index_cast %c6_i32 : i32 to index
    %c0_56 = arith.constant 0 : index
    %c0_57 = arith.constant 0 : index
    %106 = vector.load %arg6[%105, %c0_56, %c0_57] : memref<8x8x128xf32, #tpu.memory_space<vmem>>, vector<1x8x128xf32>
    %107 = vector.shape_cast %106 : vector<1x8x128xf32> to vector<8x128xf32>
    %108 = vector.shape_cast %104 : vector<8x128xf32> to vector<1x8x128xf32>
    tpu.vector_store %arg6[%105, %c0_56, %c0_57], %108 {strides = array<i32>} : memref<8x8x128xf32, #tpu.memory_space<vmem>>, vector<1x8x128xf32>,
    %c7_i32 = arith.constant 7 : i32
    %cst_58 = arith.constant 0.899999976 : f32
    %109 = vector.broadcast %cst_58 : f32 to vector<8x128xf32>
    %110 = arith.mulf %109, %104 : vector<8x128xf32>
    %111 = arith.index_cast %c7_i32 : i32 to index
    %c0_59 = arith.constant 0 : index
    %c0_60 = arith.constant 0 : index
    %112 = vector.load %arg2[%111, %c0_59, %c0_60] : memref<8x8x128xf32, #tpu.memory_space<vmem>>, vector<1x8x128xf32>
    %113 = vector.shape_cast %112 : vector<1x8x128xf32> to vector<8x128xf32>
    %114 = arith.addf %110, %113 : vector<8x128xf32>
    %115 = math.tanh %104 : vector<8x128xf32>
    %116 = arith.truncf %115 : vector<8x128xf32> to vector<8x128xbf16>
    %c0_61 = arith.constant 0 : index
    %c0_62 = arith.constant 0 : index
    %117 = vector.load %arg3[%c0_61, %c0_62] : memref<128x128xbf16, #tpu.memory_space<vmem>>, vector<128x128xbf16>
    %cst_63 = arith.constant dense<0.000000e+00> : vector<8x128xf32>
    %118 = tpu.matmul %116, %117, %cst_63 {dimension_numbers = #tpu.dot_dimension_numbers<[1], [0], [0], [1], [0, 0, 1, 1], [], []>} : vector<8x128xbf16>, vector<128x128xbf16>, vector<8x128xf32> -> vector<8x128xf32>
    %119 = arith.addf %114, %118 : vector<8x128xf32>
    %120 = arith.index_cast %c7_i32 : i32 to index
    %c0_64 = arith.constant 0 : index
    %c0_65 = arith.constant 0 : index
    %121 = vector.load %arg6[%120, %c0_64, %c0_65] : memref<8x8x128xf32, #tpu.memory_space<vmem>>, vector<1x8x128xf32>
    %122 = vector.shape_cast %121 : vector<1x8x128xf32> to vector<8x128xf32>
    %123 = vector.shape_cast %119 : vector<8x128xf32> to vector<1x8x128xf32>
    tpu.vector_store %arg6[%120, %c0_64, %c0_65], %123 {strides = array<i32>} : memref<8x8x128xf32, #tpu.memory_space<vmem>>, vector<1x8x128xf32>,
    %c8_i32 = arith.constant 8 : i32
    %c0_66 = arith.constant 0 : index
    %c0_67 = arith.constant 0 : index
    %124 = vector.load %arg8[%c0_66, %c0_67] : memref<8x128xf32, #tpu.memory_space<vmem>>, vector<8x128xf32>
    tpu.vector_store %arg8[%c0_66, %c0_67], %119 {strides = array<i32>} : memref<8x128xf32, #tpu.memory_space<vmem>>, vector<8x128xf32>,
    %c0_i32_68 = arith.constant 0 : i32
    %125 = arith.cmpi eq, %arg1, %c0_i32_68 : i32
    %126 = arith.extui %125 : i1 to i32
    %c0_i32_69 = arith.constant 0 : i32
    %127 = arith.cmpi ne, %126, %c0_i32_69 : i32
    scf.if %127 {
      %c0_72 = arith.constant 0 : index
      %c0_73 = arith.constant 0 : index
      %c0_74 = arith.constant 0 : index
      %131 = vector.load %arg6[%c0_72, %c0_73, %c0_74] : memref<8x8x128xf32, #tpu.memory_space<vmem>>, vector<1x8x128xf32>
      %132 = vector.shape_cast %131 : vector<1x8x128xf32> to vector<8x128xf32>
      %133 = math.tanh %132 : vector<8x128xf32>
      %c0_75 = arith.constant 0 : index
      %c0_76 = arith.constant 0 : index
      %134 = vector.load %arg4[%c0_75, %c0_76] : memref<1x128xf32, #tpu.memory_space<vmem>>, vector<1x128xf32>
      %135 = vector.broadcast %134 : vector<1x128xf32> to vector<8x128xf32>
      %136 = arith.mulf %133, %135 : vector<8x128xf32>
      %cst_77 = arith.constant dense<0.000000e+00> : vector<8xf32>
      %137 = vector.multi_reduction <add>, %136, %cst_77 [1] : vector<8x128xf32> to vector<8xf32>
      %138 = vector.shape_cast %137 : vector<8xf32> to vector<8x1xf32>
      %c0_78 = arith.constant 0 : index
      %139 = memref.load %arg5[%c0_78] : memref<1xf32, #tpu.memory_space<smem>>
      %140 = vector.broadcast %139 : f32 to vector<8x1xf32>
      %141 = arith.addf %138, %140 : vector<8x1xf32>
      %c0_79 = arith.constant 0 : index
      %c0_80 = arith.constant 0 : index
      %142 = vector.load %arg7[%c0_79, %c0_80] : memref<8x2xf32, #tpu.memory_space<vmem>>, vector<8x1xf32>
      tpu.vector_store %arg7[%c0_79, %c0_80], %141 {strides = array<i32>} : memref<8x2xf32, #tpu.memory_space<vmem>>, vector<8x1xf32>,
    } else {
    }
    %c0_i32_70 = arith.constant 0 : i32
    %128 = arith.cmpi eq, %arg1, %c0_i32_70 : i32
    %129 = arith.extui %128 : i1 to i32
    %c0_i32_71 = arith.constant 0 : i32
    %130 = arith.cmpi ne, %129, %c0_i32_71 : i32
    scf.if %130 {
      %131 = math.tanh %119 : vector<8x128xf32>
      %c0_72 = arith.constant 0 : index
      %c0_73 = arith.constant 0 : index
      %132 = vector.load %arg4[%c0_72, %c0_73] : memref<1x128xf32, #tpu.memory_space<vmem>>, vector<1x128xf32>
      %133 = vector.broadcast %132 : vector<1x128xf32> to vector<8x128xf32>
      %134 = arith.mulf %131, %133 : vector<8x128xf32>
      %cst_74 = arith.constant dense<0.000000e+00> : vector<8xf32>
      %135 = vector.multi_reduction <add>, %134, %cst_74 [1] : vector<8x128xf32> to vector<8xf32>
      %136 = vector.shape_cast %135 : vector<8xf32> to vector<8x1xf32>
      %c0_75 = arith.constant 0 : index
      %137 = memref.load %arg5[%c0_75] : memref<1xf32, #tpu.memory_space<smem>>
      %138 = vector.broadcast %137 : f32 to vector<8x1xf32>
      %139 = arith.addf %136, %138 : vector<8x1xf32>
      %c0_76 = arith.constant 0 : index
      %c1 = arith.constant 1 : index
      %140 = vector.load %arg7[%c0_76, %c1] : memref<8x2xf32, #tpu.memory_space<vmem>>, vector<8x1xf32>
      tpu.vector_store %arg7[%c0_76, %c1], %139 {strides = array<i32>} : memref<8x2xf32, #tpu.memory_space<vmem>>, vector<8x1xf32>,
    } else {
    }
    return
  }
  func.func @transform_0(%arg0: i32, %arg1: i32) -> (i32, i32, i32) {
    %c0_i32 = arith.constant 0 : i32
    %c0_i32_0 = arith.constant 0 : i32
    return %arg1, %arg0, %c0_i32 : i32, i32, i32
  }
  func.func @transform_1(%arg0: i32, %arg1: i32) -> (i32, i32) {
    %c0_i32 = arith.constant 0 : i32
    %c0_i32_0 = arith.constant 0 : i32
    %c0_i32_1 = arith.constant 0 : i32
    return %c0_i32, %c0_i32_0 : i32, i32
  }
  func.func @transform_2(%arg0: i32, %arg1: i32) -> (i32, i32) {
    %c0_i32 = arith.constant 0 : i32
    %c0_i32_0 = arith.constant 0 : i32
    %c0_i32_1 = arith.constant 0 : i32
    return %c0_i32, %c0_i32_0 : i32, i32
  }
  func.func @transform_3(%arg0: i32, %arg1: i32) -> i32 {
    %c0_i32 = arith.constant 0 : i32
    %c0_i32_0 = arith.constant 0 : i32
    return %c0_i32 : i32
  }
  func.func @transform_4(%arg0: i32, %arg1: i32) -> (i32, i32, i32) {
    %c0_i32 = arith.constant 0 : i32
    %c0_i32_0 = arith.constant 0 : i32
    return %arg1, %arg0, %c0_i32 : i32, i32, i32
  }
  func.func @transform_5(%arg0: i32, %arg1: i32) -> (i32, i32) {
    %c0_i32 = arith.constant 0 : i32
    %c0_i32_0 = arith.constant 0 : i32
    return %arg0, %c0_i32 : i32, i32
  }
}

</mosaic_0001>

<bundles_post_ra>
// kernel: tpu_custom_call.1
= control target key start
LH: loop header
LB: loop body
LE: loop exit
PB: predicated region body
PF: predicated region fallthrough
CT: control target
= control target key end

     0   :  { %12 = vsyncpa [#allocation5], 0  ;;  %s1636_s0 = inlined_call_operand.hbm [shape: f32[8,8,128], index: 0, kind: input, shape index: {}]   ;;  %s1637_s1 = inlined_call_operand.hbm [shape: bf16[128,128], index: 1, kind: input, shape index: {}]   ;;  %s1638_s2 = inlined_call_operand.vmem [shape: f32[1,128], index: 2, kind: input, shape index: {}]   ;;  %s1639_s3 = inlined_call_operand.<no memory space> [shape: f32[1], index: 3, kind: input, shape index: {}]   ;;  %s1640_s4 = inlined_call_operand.hbm [shape: f32[8,8,128], index: 4, kind: output, shape index: {0}]   ;;  %s1641_s5 = inlined_call_operand.vmem [shape: f32[8,2], index: 5, kind: output, shape index: {1}]  }
   0x1   :  { %13 = vsyncpa [#allocation8], 0 }
   0x2   :  { %14 = vsyncpa [#allocation6], 0  ;;  %s1473_s18 = smov [#allocation4]  }
   0x3   :  { %s20_s19 = sshll.u32 %s1473_s18, 4  ;;  %s21_s19 = int_to_ptr.vmem [resolvable:$true] %s20_s19 }
   0x4   :  { %s1415_s20 = scalar_lea.vmem %s21_s19, 1024  ;;  %p1420_p1 = scmp.lt.s32.totalorder %s21_s19, %s21_s19 }
   0x5   :  { %p1416_p0 = scmp.ne.s32.totalorder %s21_s19, %s1415_s20  ;;  %p1421_p2 = scmp.lt.s32.totalorder %s1415_s20, %s1415_s20 }
   0x7   :  { %p1422_p3 = por %p1421_p2, %p1420_p1 }
   0x9   :  { %p1423_p4 = pnand %p1422_p3, %p1416_p0 }
   0xb   :  { %1426 = shalt.err (!%p1423_p4)
}
   0xc   :  { %s1474_s21 = smov 128   ;;  %s1475_s22 = smov 8  }
   0xd   :  { %26 = dma.hbm_to_vmem [thread:$0]  %s1636_s0, 1024, %s21_s19, [#allocation5], %s1474_s21, %s1474_s21, %s1475_s22  }
   0xe   :  { %s1476_s25 = smov [#allocation7]  }
   0xf   :  { %s32_s26 = sshll.u32 %s1476_s25, 4  ;;  %s33_s26 = int_to_ptr.vmem [resolvable:$true] %s32_s26 }
  0x10   :  { %s1435_s27 = scalar_lea.vmem %s33_s26, 1024  ;;  %p1440_p6 = scmp.lt.s32.totalorder %s33_s26, %s33_s26 }
  0x11   :  { %p1436_p5 = scmp.ne.s32.totalorder %s33_s26, %s1435_s27  ;;  %p1441_p7 = scmp.lt.s32.totalorder %s1435_s27, %s1435_s27 }
  0x13   :  { %p1442_p8 = por %p1441_p7, %p1440_p6 }
  0x15   :  { %p1443_p9 = pnand %p1442_p8, %p1436_p5 }
  0x17   :  { %1446 = shalt.err (!%p1443_p9)
}
  0x18   :  { %s1477_s28 = smov 64   ;;  %s1478_s29 = smov 4  }
  0x19   :  { %38 = dma.hbm_to_vmem [thread:$0]  %s1637_s1, 1024, %s33_s26, [#allocation8], %s1477_s28, %s1477_s28, %s1478_s29  }
  0x1a   :  { %1467 = dma.done.wait [#allocation5], 1024  }
  0x1b   :  { %1468 = vsyncadd [#allocation5], 4294966272 }
  0x1c   :  { %1469 = dma.done.wait [#allocation8], 1024  }
  0x1d   :  { %1470 = vsyncadd [#allocation8], 4294966272  ;;  %v1479_v0 = vmov 0.0   ;;  %vm1480_vm0 = vmmov 0   ;;  %v1327_v1 = vld [vmem:[#allocation7 + $0x38] sm:$0xff]   ;;  %v1328_v2 = vld [vmem:[#allocation7 + $0x30] sm:$0xff]   ;;  %v977_v39 = vstv %s1639_s3 }
  0x1e   :  { %1157 = vmatprep.subr.bf16.mxu0 %v1479_v0  ;;  %1173 = vmatprep.mubr.msk.bf16.mxu0 %vm1480_vm0, %v1479_v0  ;;  %v1329_v3 = vld [vmem:[#allocation7 + $0x28] sm:$0xff]   ;;  %v1335_v4 = vld [vmem:[#allocation7 + $0x38] sm:$0xff]   ;;  %v1330_v5 = vld [vmem:[#allocation7 + $0x20] sm:$0xff]   ;;  %v1481_v12 = vmov 0.0|0.0   ;;  %vm55_vm1 = vcmask 15360   ;;  %vm979_vm2 = vcmask 7168  }
  0x1f   :  { %1177 = vmatprep.subr.bf16.mxu1 %v1479_v0  ;;  %1193 = vmatprep.mubr.msk.bf16.mxu1 %vm1480_vm0, %v1479_v0  ;;  %v1336_v6 = vld [vmem:[#allocation7 + $0x30] sm:$0xff]   ;;  %v1331_v7 = vld [vmem:[#allocation7 + $0x18] sm:$0xff]   ;;  %v1337_v8 = vld [vmem:[#allocation7 + $0x28] sm:$0xff]   ;;  %56 = vst.msk [vmem:[%s1641_s5] sm:$0xff] %vm55_vm1, %v1479_v0  ;;  %s1482_s14 = smov [#allocation9]  }
  0x20   :  { %1158 = vmatpush3.bf16.msra.mxu0 %v1327_v1  ;;  %1178 = vmatpush3.bf16.msra.mxu1 %v1335_v4  ;;  %v1332_v9 = vld [vmem:[#allocation7 + $0x10] sm:$0xff]   ;;  %v1333_v10 = vld [vmem:[#allocation7 + $0x8] sm:$0xff]   ;;  %v1334_v11 = vld [vmem:[#allocation7] sm:$0xff]   ;;  %s1002_s15 = sshll.u32 %s1482_s14, 4  ;;  %s1003_s15 = int_to_ptr.vmem [resolvable:$true] %s1002_s15 }
  0x21   :  { %1159 = vmatprep.subr.bf16.mxu0 %v1479_v0  ;;  %1179 = vmatprep.subr.bf16.mxu1 %v1479_v0  ;;  %v1338_v13 = vld [vmem:[#allocation7 + $0x20] sm:$0xff]   ;;  %v1339_v14 = vld [vmem:[#allocation7 + $0x18] sm:$0xff]   ;;  %v1340_v15 = vld [vmem:[#allocation7 + $0x10] sm:$0xff]   ;;  %s1447_s16 = scalar_lea.vmem %s1003_s15, 1024  ;;  %p1452_p11 = scmp.lt.s32.totalorder %s1003_s15, %s1003_s15 }
  0x22   :  { %v1341_v16 = vld [vmem:[#allocation7 + $0x8] sm:$0xff]   ;;  %v1342_v17 = vld [vmem:[#allocation7] sm:$0xff]   ;;  %v1343_v28 = vld [vmem:[#allocation7 + $0x38] sm:$0xff]   ;;  %p1448_p10 = scmp.ne.s32.totalorder %s1003_s15, %s1447_s16  ;;  %p1453_p12 = scmp.lt.s32.totalorder %s1447_s16, %s1447_s16 }
  0x23   :  { %v59_v18 = vld [vmem:[#allocation4] sm:$0xff]  ;;  %v1344_v29 = vld [vmem:[#allocation7 + $0x30] sm:$0xff]   ;;  %v1345_v30 = vld [vmem:[#allocation7 + $0x28] sm:$0xff]  }
  0x24   :  { %1160 = vmatpush3.bf16.msra.mxu0 %v1328_v2  ;;  %1180 = vmatpush3.bf16.msra.mxu1 %v1336_v6  ;;  %v1553_v24 = vld [vmem:[%s1638_s2] ss:$0 sm:$0xff]  ;;  %v1347_v32 = vld [vmem:[#allocation7 + $0x18] sm:$0xff]   ;;  %v1348_v33 = vld [vmem:[#allocation7 + $0x10] sm:$0xff]   ;;  %p1454_p13 = por %p1453_p12, %p1452_p11 }
  0x25   :  { %1161 = vmatprep.subr.bf16.mxu0 %v1479_v0  ;;  %1181 = vmatprep.subr.bf16.mxu1 %v1479_v0  ;;  %v1346_v31 = vld [vmem:[#allocation7 + $0x20] sm:$0xff]   ;;  %v1349_v34 = vld [vmem:[#allocation7 + $0x8] sm:$0xff]   ;;  %v1351_v36 = vld [vmem:[#allocation7 + $0x38] sm:$0xff]  }
  0x26   :  { %v1350_v35 = vld [vmem:[#allocation7] sm:$0xff]   ;;  %v1352_v37 = vld [vmem:[#allocation7 + $0x30] sm:$0xff]   ;;  %v1353_v38 = vld [vmem:[#allocation7 + $0x28] sm:$0xff]   ;;  %p1455_p0 = pnand %p1454_p13, %p1448_p10 }
  0x27   :  { %v171_v43 = vld [vmem:[#allocation4 + $0x8] sm:$0xff]  ;;  %v1354_v52 = vld [vmem:[#allocation7 + $0x20] sm:$0xff]   ;;  %v1355_v53 = vld [vmem:[#allocation7 + $0x18] sm:$0xff]  }
  0x28   :  { %1162 = vmatpush3.bf16.msra.mxu0 %v1329_v3  ;;  %1182 = vmatpush3.bf16.msra.mxu1 %v1337_v8  ;;  %v1356_v54 = vld [vmem:[#allocation7 + $0x10] sm:$0xff]   ;;  %v1357_v55 = vld [vmem:[#allocation7 + $0x8] sm:$0xff]   ;;  %v1358_v56 = vld [vmem:[#allocation7] sm:$0xff]  }
  0x29   :  { %1163 = vmatprep.subr.bf16.mxu0 %v1479_v0  ;;  %1183 = vmatprep.subr.bf16.mxu1 %v1479_v0  ;;  %v1359_v57 = vld [vmem:[#allocation7 + $0x38] sm:$0xff]   ;;  %v1360_v58 = vld [vmem:[#allocation7 + $0x30] sm:$0xff]   ;;  %v1361_v59 = vld [vmem:[#allocation7 + $0x28] sm:$0xff]  }
  0x2a   :  { %v284_v61 = vld [vmem:[#allocation4 + $0x10] sm:$0xff]  ;;  %v1363_v8 = vld [vmem:[#allocation7 + $0x18] sm:$0xff]  }
  0x2c   :  { %1164 = vmatpush3.bf16.msra.mxu0 %v1330_v5  ;;  %1184 = vmatpush3.bf16.msra.mxu1 %v1338_v13  ;;  %v1368_v13 = vld [vmem:[#allocation7 + $0x30] sm:$0xff]  }
  0x2d   :  { %1165 = vmatprep.subr.bf16.mxu0 %v1479_v0  ;;  %1185 = vmatprep.subr.bf16.mxu1 %v1479_v0 }
  0x30   :  { %1166 = vmatpush3.bf16.msra.mxu0 %v1331_v7  ;;  %1186 = vmatpush3.bf16.msra.mxu1 %v1339_v14  ;;  %v1362_v7 = vld [vmem:[#allocation7 + $0x20] sm:$0xff]   ;;  %v1369_v14 = vld [vmem:[#allocation7 + $0x28] sm:$0xff]  }
  0x31   :  { %1167 = vmatprep.subr.bf16.mxu0 %v1479_v0  ;;  %1187 = vmatprep.subr.bf16.mxu1 %v1479_v0 }
  0x34   :  { %1168 = vmatpush3.bf16.msra.mxu0 %v1332_v9  ;;  %1188 = vmatpush3.bf16.msra.mxu1 %v1340_v15  ;;  %v1364_v9 = vld [vmem:[#allocation7 + $0x10] sm:$0xff]  }
  0x35   :  { %1169 = vmatprep.subr.bf16.mxu0 %v1479_v0  ;;  %1189 = vmatprep.subr.bf16.mxu1 %v1479_v0 }
  0x38   :  { %1170 = vmatpush3.bf16.msra.mxu0 %v1333_v10  ;;  %1190 = vmatpush3.bf16.msra.mxu1 %v1341_v16  ;;  %v1365_v10 = vld [vmem:[#allocation7 + $0x8] sm:$0xff]   ;;  %v397_v16 = vld [vmem:[#allocation4 + $0x18] sm:$0xff] }
  0x39   :  { %1171 = vmatprep.subr.bf16.mxu0 %v1479_v0  ;;  %1191 = vmatprep.subr.bf16.mxu1 %v1479_v0 }
  0x3c   :  { %1172 = vmatpush3.bf16.msra.mxu0 %v1334_v11  ;;  %1192 = vmatpush3.bf16.msra.mxu1 %v1342_v17  ;;  %v1366_v11 = vld [vmem:[#allocation7] sm:$0xff]  }
  0x3d   :  { %1197 = vmatprep.subr.bf16.mxu0 %v1479_v0  ;;  %1217 = vmatprep.subr.bf16.mxu1 %v1479_v0 }
  0x3f   :  { %1174 = vmatmul.mubr.bf16.vlgmr.msra.gmra.mxu0 %v1481_v12  ;;  %v1367_v12 = vld [vmem:[#allocation7 + $0x38] sm:$0xff]  }
  0x40   :  { %1213 = vmatprep.mubr.msk.bf16.mxu0 %vm1480_vm0, %v1479_v0  ;;  %1198 = vmatpush3.bf16.msra.mxu0 %v1343_v28  ;;  %v1372_v28 = vld [vmem:[#allocation7 + $0x10] sm:$0xff]  }
  0x41   :  { %1199 = vmatprep.subr.bf16.mxu0 %v1479_v0 }
  0x44   :  { %1200 = vmatpush3.bf16.msra.mxu0 %v1344_v29  ;;  %v1373_v29 = vld [vmem:[#allocation7 + $0x8] sm:$0xff]  }
  0x45   :  { %1201 = vmatprep.subr.bf16.mxu0 %v1479_v0 }
  0x48   :  { %1202 = vmatpush3.bf16.msra.mxu0 %v1345_v30  ;;  %v1374_v30 = vld [vmem:[#allocation7] sm:$0xff]  }
  0x49   :  { %1203 = vmatprep.subr.bf16.mxu0 %v1479_v0 }
  0x4c   :  { %1204 = vmatpush3.bf16.msra.mxu0 %v1346_v31  ;;  %v1375_v31 = vld [vmem:[#allocation7 + $0x38] sm:$0xff]  }
  0x4d   :  { %1205 = vmatprep.subr.bf16.mxu0 %v1479_v0 }
  0x50   :  { %1206 = vmatpush3.bf16.msra.mxu0 %v1347_v32  ;;  %v1376_v32 = vld [vmem:[#allocation7 + $0x30] sm:$0xff]  }
  0x51   :  { %1207 = vmatprep.subr.bf16.mxu0 %v1479_v0 }
  0x54   :  { %1208 = vmatpush3.bf16.msra.mxu0 %v1348_v33  ;;  %v1377_v33 = vld [vmem:[#allocation7 + $0x28] sm:$0xff]  }
  0x55   :  { %1209 = vmatprep.subr.bf16.mxu0 %v1479_v0 }
  0x58   :  { %1210 = vmatpush3.bf16.msra.mxu0 %v1349_v34 }
  0x59   :  { %1211 = vmatprep.subr.bf16.mxu0 %v1479_v0 }
  0x5c   :  { %1212 = vmatpush3.bf16.msra.mxu0 %v1350_v35  ;;  %v510_v35 = vld [vmem:[#allocation4 + $0x20] sm:$0xff] }
  0x5d   :  { %1237 = vmatprep.subr.bf16.mxu0 %v1479_v0 }
  0xff   :  { %v161_v19 = vpop.f32.mrf.mxu0 }
 0x100   :  { %v167_v20 = vadd.f32 %v161_v19, %v59_v18 }
 0x101   :  { %v1175_v21 = vpop.f32.mrf.mxu0 }
 0x102   :  { %168 = vst [vmem:[#allocation9] sm:$0xff] %v167_v20  ;;  %1391 = vtanh.f32 %v167_v20  ;;  %v169_v42 = vmul.f32 0.9, %v167_v20 }
 0x103   :  { %v164_v22 = vpop.f32.mrf.mxu0 }
 0x104   :  { %v172_v44 = vadd.f32 %v171_v43, %v169_v42 }
 0x105   :  { %v1176_v23 = vpop.f32.mrf.mxu0 }
 0x10f   :  { %v1392_v25 = vpop.eup %1391 }
 0x110   :  { %v174_v26 = vpack.c.bf16 %v1392_v25, %v1392_v25  ;;  %v973_v27 = vmul.f32 %v1392_v25, %v1553_v24 }
 0x112   :  { %1194 = vmatmul.mubr.bf16.vlgmr.msra.gmra.mxu1 %v174_v26  ;;  %974 = vadd.xlane.f32.xlu0 %v973_v27  ;;  %v1370_v26 = vld [vmem:[#allocation7 + $0x20] sm:$0xff]   ;;  %v1371_v27 = vld [vmem:[#allocation7 + $0x18] sm:$0xff]  }
 0x113   :  { %1233 = vmatprep.mubr.msk.bf16.mxu1 %vm1480_vm0, %v1479_v0  ;;  %1218 = vmatpush3.bf16.msra.mxu1 %v1351_v36 }
 0x114   :  { %1219 = vmatprep.subr.bf16.mxu1 %v1479_v0 }
 0x117   :  { %1220 = vmatpush3.bf16.msra.mxu1 %v1352_v37 }
 0x118   :  { %1221 = vmatprep.subr.bf16.mxu1 %v1479_v0 }
 0x11b   :  { %1222 = vmatpush3.bf16.msra.mxu1 %v1353_v38 }
 0x11c   :  { %1223 = vmatprep.subr.bf16.mxu1 %v1479_v0 }
 0x11f   :  { %1224 = vmatpush3.bf16.msra.mxu1 %v1354_v52  ;;  %v1385_v52 = vld [vmem:[#allocation7 + $0x28] sm:$0xff]  }
 0x120   :  { %1225 = vmatprep.subr.bf16.mxu1 %v1479_v0 }
 0x123   :  { %1226 = vmatpush3.bf16.msra.mxu1 %v1355_v53 }
 0x124   :  { %1227 = vmatprep.subr.bf16.mxu1 %v1479_v0 }
 0x127   :  { %1228 = vmatpush3.bf16.msra.mxu1 %v1356_v54  ;;  %v623_v54 = vld [vmem:[#allocation4 + $0x28] sm:$0xff] }
 0x128   :  { %1229 = vmatprep.subr.bf16.mxu1 %v1479_v0 }
 0x12b   :  { %1230 = vmatpush3.bf16.msra.mxu1 %v1357_v55 }
 0x12c   :  { %1231 = vmatprep.subr.bf16.mxu1 %v1479_v0 }
 0x12f   :  { %1232 = vmatpush3.bf16.msra.mxu1 %v1358_v56 }
 0x130   :  { %1257 = vmatprep.subr.bf16.mxu1 %v1479_v0 }
 0x19b   :  { %v975_v40 = vpop.xlane.xlu0 %974 }
 0x19c   :  { %v978_v41 = vadd.f32 %v977_v39, %v975_v40 }
 0x19e   :  { %980 = vst.msk [vmem:[%s1641_s5] sm:$0xff] %vm979_vm2, %v978_v41 }
 0x1d2   :  { %v273_v45 = vpop.f32.mrf.mxu1 }
 0x1d3   :  { %v279_v46 = vadd.f32 %v273_v45, %v172_v44  ;;  %v1378_v45 = vld [vmem:[#allocation7 + $0x20] sm:$0xff]  }
 0x1d4   :  { %v1195_v47 = vpop.f32.mrf.mxu1 }
 0x1d5   :  { %281 = vst [vmem:[#allocation9 + $0x8] sm:$0xff] %v279_v46  ;;  %1393 = vtanh.f32 %v279_v46  ;;  %v282_v60 = vmul.f32 0.9, %v279_v46  ;;  %v1379_v46 = vld [vmem:[#allocation7 + $0x18] sm:$0xff]   ;;  %v1380_v47 = vld [vmem:[#allocation7 + $0x10] sm:$0xff]  }
 0x1d6   :  { %v276_v48 = vpop.f32.mrf.mxu1 }
 0x1d7   :  { %v285_v62 = vadd.f32 %v284_v61, %v282_v60  ;;  %v1381_v48 = vld [vmem:[#allocation7 + $0x8] sm:$0xff]  }
 0x1d8   :  { %v1196_v49 = vpop.f32.mrf.mxu1 }
 0x1d9   :  { %v1382_v49 = vld [vmem:[#allocation7] sm:$0xff]  }
 0x1e2   :  { %v1394_v50 = vpop.eup %1393 }
 0x1e3   :  { %v287_v51 = vpack.c.bf16 %v1394_v50, %v1394_v50  ;;  %v1383_v50 = vld [vmem:[#allocation7 + $0x38] sm:$0xff]  }
 0x1e5   :  { %1214 = vmatmul.mubr.bf16.vlgmr.msra.gmra.mxu0 %v287_v51  ;;  %v1384_v51 = vld [vmem:[#allocation7 + $0x30] sm:$0xff]  }
 0x1e6   :  { %1253 = vmatprep.mubr.msk.bf16.mxu0 %vm1480_vm0, %v1479_v0  ;;  %1238 = vmatpush3.bf16.msra.mxu0 %v1359_v57 }
 0x1e7   :  { %1239 = vmatprep.subr.bf16.mxu0 %v1479_v0 }
 0x1ea   :  { %1240 = vmatpush3.bf16.msra.mxu0 %v1360_v58 }
 0x1eb   :  { %1241 = vmatprep.subr.bf16.mxu0 %v1479_v0 }
 0x1ee   :  { %1242 = vmatpush3.bf16.msra.mxu0 %v1361_v59 }
 0x1ef   :  { %1243 = vmatprep.subr.bf16.mxu0 %v1479_v0 }
 0x1f2   :  { %1244 = vmatpush3.bf16.msra.mxu0 %v1362_v7 }
 0x1f3   :  { %1245 = vmatprep.subr.bf16.mxu0 %v1479_v0 }
 0x1f6   :  { %1246 = vmatpush3.bf16.msra.mxu0 %v1363_v8 }
 0x1f7   :  { %1247 = vmatprep.subr.bf16.mxu0 %v1479_v0 }
 0x1fa   :  { %1248 = vmatpush3.bf16.msra.mxu0 %v1364_v9 }
 0x1fb   :  { %1249 = vmatprep.subr.bf16.mxu0 %v1479_v0 }
 0x1fe   :  { %1250 = vmatpush3.bf16.msra.mxu0 %v1365_v10 }
 0x1ff   :  { %1251 = vmatprep.subr.bf16.mxu0 %v1479_v0 }
 0x202   :  { %1252 = vmatpush3.bf16.msra.mxu0 %v1366_v11 }
 0x203   :  { %1277 = vmatprep.subr.bf16.mxu0 %v1479_v0 }
 0x2a5   :  { %v386_v63 = vpop.f32.mrf.mxu0 }
 0x2a6   :  { %v392_v1 = vadd.f32 %v386_v63, %v285_v62  ;;  %v1386_v63 = vld [vmem:[#allocation7 + $0x20] sm:$0xff]  }
 0x2a7   :  { %v1215_v2 = vpop.f32.mrf.mxu0 }
 0x2a8   :  { %394 = vst [vmem:[#allocation9 + $0x10] sm:$0xff] %v392_v1  ;;  %1395 = vtanh.f32 %v392_v1  ;;  %v395_v15 = vmul.f32 0.9, %v392_v1  ;;  %v1387_v1 = vld [vmem:[#allocation7 + $0x18] sm:$0xff]   ;;  %v1388_v2 = vld [vmem:[#allocation7 + $0x10] sm:$0xff]  }
 0x2a9   :  { %v389_v3 = vpop.f32.mrf.mxu0 }
 0x2aa   :  { %v398_v17 = vadd.f32 %v397_v16, %v395_v15  ;;  %v1389_v3 = vld [vmem:[#allocation7 + $0x8] sm:$0xff]   ;;  %v849_v16 = vld [vmem:[#allocation4 + $0x38] sm:$0xff] }
 0x2ab   :  { %v1216_v4 = vpop.f32.mrf.mxu0 }
 0x2ac   :  { %v1390_v4 = vld [vmem:[#allocation7] sm:$0xff]  }
 0x2b5   :  { %v1396_v5 = vpop.eup %1395 }
 0x2b6   :  { %v400_v6 = vpack.c.bf16 %v1396_v5, %v1396_v5 }
 0x2b8   :  { %1234 = vmatmul.mubr.bf16.vlgmr.msra.gmra.mxu1 %v400_v6  ;;  %v736_v6 = vld [vmem:[#allocation4 + $0x30] sm:$0xff] }
 0x2b9   :  { %1273 = vmatprep.mubr.msk.bf16.mxu1 %vm1480_vm0, %v1479_v0  ;;  %1258 = vmatpush3.bf16.msra.mxu1 %v1367_v12 }
 0x2ba   :  { %1259 = vmatprep.subr.bf16.mxu1 %v1479_v0 }
 0x2bd   :  { %1260 = vmatpush3.bf16.msra.mxu1 %v1368_v13 }
 0x2be   :  { %1261 = vmatprep.subr.bf16.mxu1 %v1479_v0 }
 0x2c1   :  { %1262 = vmatpush3.bf16.msra.mxu1 %v1369_v14 }
 0x2c2   :  { %1263 = vmatprep.subr.bf16.mxu1 %v1479_v0 }
 0x2c5   :  { %1264 = vmatpush3.bf16.msra.mxu1 %v1370_v26 }
 0x2c6   :  { %1265 = vmatprep.subr.bf16.mxu1 %v1479_v0 }
 0x2c9   :  { %1266 = vmatpush3.bf16.msra.mxu1 %v1371_v27 }
 0x2ca   :  { %1267 = vmatprep.subr.bf16.mxu1 %v1479_v0 }
 0x2cd   :  { %1268 = vmatpush3.bf16.msra.mxu1 %v1372_v28 }
 0x2ce   :  { %1269 = vmatprep.subr.bf16.mxu1 %v1479_v0 }
 0x2d1   :  { %1270 = vmatpush3.bf16.msra.mxu1 %v1373_v29 }
 0x2d2   :  { %1271 = vmatprep.subr.bf16.mxu1 %v1479_v0 }
 0x2d5   :  { %1272 = vmatpush3.bf16.msra.mxu1 %v1374_v30 }
 0x2d6   :  { %1297 = vmatprep.subr.bf16.mxu1 %v1479_v0 }
 0x378   :  { %v499_v18 = vpop.f32.mrf.mxu1 }
 0x379   :  { %v505_v19 = vadd.f32 %v499_v18, %v398_v17 }
 0x37a   :  { %v1235_v20 = vpop.f32.mrf.mxu1 }
 0x37b   :  { %507 = vst [vmem:[#allocation9 + $0x18] sm:$0xff] %v505_v19  ;;  %1397 = vtanh.f32 %v505_v19  ;;  %v508_v34 = vmul.f32 0.9, %v505_v19 }
 0x37c   :  { %v502_v21 = vpop.f32.mrf.mxu1 }
 0x37d   :  { %v511_v36 = vadd.f32 %v510_v35, %v508_v34 }
 0x37e   :  { %v1236_v22 = vpop.f32.mrf.mxu1 }
 0x388   :  { %v1398_v23 = vpop.eup %1397 }
 0x389   :  { %v513_v25 = vpack.c.bf16 %v1398_v23, %v1398_v23 }
 0x38b   :  { %1254 = vmatmul.mubr.bf16.vlgmr.msra.gmra.mxu0 %v513_v25 }
 0x38c   :  { %1293 = vmatprep.mubr.msk.bf16.mxu0 %vm1480_vm0, %v1479_v0  ;;  %1278 = vmatpush3.bf16.msra.mxu0 %v1375_v31 }
 0x38d   :  { %1279 = vmatprep.subr.bf16.mxu0 %v1479_v0 }
 0x390   :  { %1280 = vmatpush3.bf16.msra.mxu0 %v1376_v32 }
 0x391   :  { %1281 = vmatprep.subr.bf16.mxu0 %v1479_v0 }
 0x394   :  { %1282 = vmatpush3.bf16.msra.mxu0 %v1377_v33 }
 0x395   :  { %1283 = vmatprep.subr.bf16.mxu0 %v1479_v0 }
 0x398   :  { %1284 = vmatpush3.bf16.msra.mxu0 %v1378_v45 }
 0x399   :  { %1285 = vmatprep.subr.bf16.mxu0 %v1479_v0 }
 0x39c   :  { %1286 = vmatpush3.bf16.msra.mxu0 %v1379_v46 }
 0x39d   :  { %1287 = vmatprep.subr.bf16.mxu0 %v1479_v0 }
 0x3a0   :  { %1288 = vmatpush3.bf16.msra.mxu0 %v1380_v47 }
 0x3a1   :  { %1289 = vmatprep.subr.bf16.mxu0 %v1479_v0 }
 0x3a4   :  { %1290 = vmatpush3.bf16.msra.mxu0 %v1381_v48 }
 0x3a5   :  { %1291 = vmatprep.subr.bf16.mxu0 %v1479_v0 }
 0x3a8   :  { %1292 = vmatpush3.bf16.msra.mxu0 %v1382_v49 }
 0x44b   :  { %v612_v37 = vpop.f32.mrf.mxu0 }
 0x44c   :  { %v618_v38 = vadd.f32 %v612_v37, %v511_v36 }
 0x44d   :  { %v1255_v40 = vpop.f32.mrf.mxu0 }
 0x44e   :  { %620 = vst [vmem:[#allocation9 + $0x20] sm:$0xff] %v618_v38  ;;  %1399 = vtanh.f32 %v618_v38  ;;  %v621_v53 = vmul.f32 0.9, %v618_v38 }
 0x44f   :  { %v615_v41 = vpop.f32.mrf.mxu0 }
 0x450   :  { %v624_v55 = vadd.f32 %v623_v54, %v621_v53 }
 0x451   :  { %v1256_v42 = vpop.f32.mrf.mxu0 }
 0x45b   :  { %v1400_v43 = vpop.eup %1399 }
 0x45c   :  { %v626_v44 = vpack.c.bf16 %v1400_v43, %v1400_v43 }
 0x45e   :  { %1274 = vmatmul.mubr.bf16.vlgmr.msra.gmra.mxu1 %v626_v44 }
 0x45f   :  { %1313 = vmatprep.mubr.msk.bf16.mxu1 %vm1480_vm0, %v1479_v0  ;;  %1298 = vmatpush3.bf16.msra.mxu1 %v1383_v50 }
 0x460   :  { %1299 = vmatprep.subr.bf16.mxu1 %v1479_v0 }
 0x463   :  { %1300 = vmatpush3.bf16.msra.mxu1 %v1384_v51 }
 0x464   :  { %1301 = vmatprep.subr.bf16.mxu1 %v1479_v0 }
 0x467   :  { %1302 = vmatpush3.bf16.msra.mxu1 %v1385_v52 }
 0x468   :  { %1303 = vmatprep.subr.bf16.mxu1 %v1479_v0 }
 0x46b   :  { %1304 = vmatpush3.bf16.msra.mxu1 %v1386_v63 }
 0x46c   :  { %1305 = vmatprep.subr.bf16.mxu1 %v1479_v0 }
 0x46f   :  { %1306 = vmatpush3.bf16.msra.mxu1 %v1387_v1 }
 0x470   :  { %1307 = vmatprep.subr.bf16.mxu1 %v1479_v0 }
 0x473   :  { %1308 = vmatpush3.bf16.msra.mxu1 %v1388_v2 }
 0x474   :  { %1309 = vmatprep.subr.bf16.mxu1 %v1479_v0 }
 0x477   :  { %1310 = vmatpush3.bf16.msra.mxu1 %v1389_v3 }
 0x478   :  { %1311 = vmatprep.subr.bf16.mxu1 %v1479_v0 }
 0x47b   :  { %1312 = vmatpush3.bf16.msra.mxu1 %v1390_v4 }
 0x51e   :  { %v725_v56 = vpop.f32.mrf.mxu1 }
 0x51f   :  { %v731_v57 = vadd.f32 %v725_v56, %v624_v55 }
 0x520   :  { %v1275_v58 = vpop.f32.mrf.mxu1 }
 0x521   :  { %733 = vst [vmem:[#allocation9 + $0x28] sm:$0xff] %v731_v57  ;;  %1401 = vtanh.f32 %v731_v57  ;;  %v734_v5 = vmul.f32 0.9, %v731_v57 }
 0x522   :  { %v728_v59 = vpop.f32.mrf.mxu1 }
 0x523   :  { %v737_v7 = vadd.f32 %v736_v6, %v734_v5 }
 0x524   :  { %v1276_v60 = vpop.f32.mrf.mxu1 }
 0x52e   :  { %v1402_v61 = vpop.eup %1401 }
 0x52f   :  { %v739_v62 = vpack.c.bf16 %v1402_v61, %v1402_v61 }
 0x531   :  { %1294 = vmatmul.mubr.bf16.vlgmr.msra.gmra.mxu0 %v739_v62 }
 0x5f1   :  { %v838_v8 = vpop.f32.mrf.mxu0 }
 0x5f2   :  { %v844_v9 = vadd.f32 %v838_v8, %v737_v7 }
 0x5f3   :  { %v1295_v10 = vpop.f32.mrf.mxu0 }
 0x5f4   :  { %846 = vst [vmem:[#allocation9 + $0x30] sm:$0xff] %v844_v9  ;;  %1403 = vtanh.f32 %v844_v9  ;;  %v847_v15 = vmul.f32 0.9, %v844_v9 }
 0x5f5   :  { %v841_v11 = vpop.f32.mrf.mxu0 }
 0x5f6   :  { %v850_v17 = vadd.f32 %v849_v16, %v847_v15 }
 0x5f7   :  { %v1296_v12 = vpop.f32.mrf.mxu0 }
 0x601   :  { %v1404_v13 = vpop.eup %1403 }
 0x602   :  { %v852_v14 = vpack.c.bf16 %v1404_v13, %v1404_v13 }
 0x604   :  { %1314 = vmatmul.mubr.bf16.vlgmr.msra.gmra.mxu1 %v852_v14 }
 0x6c4   :  { %v951_v18 = vpop.f32.mrf.mxu1 }
 0x6c5   :  { %v957_v19 = vadd.f32 %v951_v18, %v850_v17 }
 0x6c6   :  { %v1315_v0 = vpop.f32.mrf.mxu1 }
 0x6c7   :  { %959 = vst [vmem:[#allocation9 + $0x38] sm:$0xff] %v957_v19  ;;  %1405 = vtanh.f32 %v957_v19 }
 0x6c8   :  { %v954_v20 = vpop.f32.mrf.mxu1 }
 0x6ca   :  { %v1316_v21 = vpop.f32.mrf.mxu1 }
 0x6d4   :  { %v1406_v22 = vpop.eup %1405 }
 0x6d5   :  { %v989_v23 = vmul.f32 %v1406_v22, %v1553_v24 }
 0x6d7   :  { %990 = vadd.xlane.f32.xlu0 %v989_v23 }
 0x6d8   :  { %1458 = shalt.err (!%p1455_p0)
}
 0x6d9   :  { %1008 = dma.vmem_to_hbm [thread:$0]  %s1003_s15, 1024, %s1640_s4, [#allocation6], %s1474_s21, %s1474_s21, %s1475_s22   ;;  %vm995_vm3 = vcmask 15368  }
 0x760   :  { %v991_v24 = vpop.xlane.xlu0 %990 }
 0x761   :  { %v994_v25 = vadd.f32 %v991_v24, %v977_v39 }
 0x763   :  { %996 = vst.msk [vmem:[%s1641_s5] sm:$0xff] %vm995_vm3, %v994_v25 }
 0x764   :  { %1471 = dma.done.wait [#allocation6], 1024  }
 0x765   :  { %1472 = vsyncadd [#allocation6], 4294966272 }
 0x766   :  { %1016 = vsyncpa [#allocation5], 1 }
 0x767   :  { %1017 = vsyncpa [#allocation8], 1 }
 0x768   :  { %1018 = vsyncpa [#allocation6], 1 }

</bundles_post_ra>
